<compile_context>
chip_gen: v5e
topology: v5e:2x2
jax: 0.10.0
libtpu: 0.0.40
codegen_flags: <defaults>
</compile_context>

<pallas_src>
import functools

import jax
import jax.numpy as jnp
from jax.experimental import pallas as pl
from jax.experimental.pallas import tpu as pltpu


def _tv_kernel(x_ref, hs_ref, ws_ref, out_ref, *, w, planes_per_block, num_planes):
    x = x_ref[...]                       # (B, H*W), native dtype (bf16 stays bf16)

    if num_planes % planes_per_block != 0:
        # Zero the padded (out-of-bounds) planes of the final partial block.
        # Selecting on x itself is one op/element and NaN/Inf-robust; planes
        # are independent rows here, so zero rows contribute zero diffs.
        row = jax.lax.broadcasted_iota(jnp.int32, (planes_per_block, 1), 0)
        valid = (pl.program_id(0) * planes_per_block + row) < num_planes
        x = jnp.where(valid, x, 0)

    # roll semantics: rolled[k] = x[k - shift]; wrap lanes are zeroed by the
    # masks, which also carry weight / (N * count) folded in (f32).
    dh = jnp.abs(x - pltpu.roll(x, shift=w, axis=1))   # row-above neighbour
    dw = jnp.abs(x - pltpu.roll(x, shift=1, axis=1))   # left neighbour
    part = dh * hs_ref[...] + dw * ws_ref[...]          # promotes to f32

    # Single fused lane-dense partial per block (unmasked vst, one reduce).
    out_ref[...] = jnp.broadcast_to(jnp.sum(part, keepdims=True), (1, 128))


def _planes_per_block(num_planes, plane_bytes, target_bytes=4 * 1024 * 1024):
    """Planes per grid step: prefer a (multiple-of-8) divisor of num_planes near
    the byte target so there is no padded tail block; fall back to a
    multiple-of-8 block plus a cheap in-kernel tail select."""
    b_target = int(max(1, target_bytes // plane_bytes))
    if b_target >= num_planes:
        return int(num_planes)
    best, best8 = 1, 0
    for d in range(1, b_target + 1):
        if num_planes % d == 0:
            best = d
            if d % 8 == 0:
                best8 = d
    if best8 >= max(8, b_target // 4):
        return best8
    if best >= max(1, b_target // 2):
        return best
    if b_target >= 8:
        return (b_target // 8) * 8
    return b_target


def tvl1_loss(x, tv_loss_weight=1.0):
    """x: (N, C, H, W) array. Returns scalar f32 TV-L1 loss (PyTorch TVL1 semantics)."""
    n, c, h, w = x.shape
    num_planes = n * c
    plane = h * w
    x_flat = x.reshape(num_planes, plane)          # lane-dense: H*W maps to lanes

    itemsize = x.dtype.itemsize
    b = _planes_per_block(num_planes, plane * itemsize)
    num_blocks = pl.cdiv(num_planes, b)

    # Fold ALL loss scaling into the resident masks.
    # NOTE: like the PyTorch module, H == 1 or W == 1 divides by zero (-> nan).
    count_h = c * (h - 1) * w
    count_w = c * h * (w - 1)
    hscale = jnp.float32(tv_loss_weight) / jnp.float32(n * count_h)
    wscale = jnp.float32(tv_loss_weight) / jnp.float32(n * count_w)
    k = jnp.arange(plane, dtype=jnp.int32)
    hs = jnp.where(k >= w, hscale, 0.0).astype(jnp.float32).reshape(1, plane)
    ws = jnp.where((k % w) != 0, wscale, 0.0).astype(jnp.float32).reshape(1, plane)

    kernel = functools.partial(
        _tv_kernel, w=w, planes_per_block=b, num_planes=num_planes)

    cost = pl.CostEstimate(
        flops=8 * num_planes * plane,
        transcendentals=0,
        bytes_accessed=(num_planes * plane * itemsize
                        + 2 * plane * 4
                        + num_blocks * 128 * 4),
    )

    # VMEM budget: double-buffered x block + two (double-buffered) f32 masks.
    vmem_need = 2 * b * plane * itemsize + 4 * plane * 4 + (2 << 20)
    params = {"dimension_semantics": ("parallel",)}
    if vmem_need <= (32 << 20):
        params["vmem_limit_bytes"] = int(max(vmem_need, 16 << 20))
    # TODO(synk): when vmem_need > 32 MiB (whole-plane fallback on huge images),
    # switch to intra-plane H tiling with a 1-row halo.

    parts = pl.pallas_call(
        kernel,
        out_shape=jax.ShapeDtypeStruct((num_blocks, 128), jnp.float32),
        grid_spec=pltpu.PrefetchScalarGridSpec(
            num_scalar_prefetch=0,
            grid=(num_blocks,),
            in_specs=[
                pl.BlockSpec((b, plane), lambda i: (i, 0)),
                pl.BlockSpec((1, plane), lambda i: (0, 0)),   # hs: resident
                pl.BlockSpec((1, plane), lambda i: (0, 0)),   # ws: resident
            ],
            out_specs=pl.BlockSpec((1, 128), lambda i: (i, 0)),
        ),
        compiler_params=pltpu.CompilerParams(**params),
        cost_estimate=cost,
    )(x_flat, hs, ws)

    # Tiny final reduction over per-block partials (scaling already folded in).
    return jnp.sum(parts[:, 0])


def _tvl1_ref(x, tv_loss_weight=1.0):
    n, c, h, w = x.shape
    count_h = c * (h - 1) * w
    count_w = c * h * (w - 1)
    h_tv = jnp.sum(jnp.abs(x[:, :, 1:, :] - x[:, :, : h - 1, :]))
    w_tv = jnp.sum(jnp.abs(x[:, :, :, 1:] - x[:, :, :, : w - 1]))
    return tv_loss_weight * (h_tv / count_h + w_tv / count_w) / n


if __name__ == "__main__":
    key = jax.random.PRNGKey(0)
    x = jax.random.normal(key, (2, 4, 16, 16), dtype=jnp.float32)

    out = tvl1_loss(x, tv_loss_weight=1.0)
    out = jax.block_until_ready(out)

    ref = _tvl1_ref(x, 1.0)
    assert jnp.allclose(out, ref, rtol=5e-5, atol=1e-6), (out, ref)
    print("KERNEL_OK")
</pallas_src>

<mosaic_0001>
module attributes {stable_mosaic.version = 11 : i64} {
  func.func @_tv_kernel(%arg0: i32, %arg1: memref<8x256xf32, #tpu.memory_space<vmem>>, %arg2: memref<1x256xf32, #tpu.memory_space<vmem>>, %arg3: memref<1x256xf32, #tpu.memory_space<vmem>>, %arg4: memref<1x128xf32, #tpu.memory_space<vmem>>) attributes {dimension_semantics = [#tpu.dimension_semantics<parallel>], iteration_bounds = array<i64: 1>, scalar_prefetch = 0 : i64, scratch_operands = 0 : i64, tpu.core_type = #tpu.core_type<tc>, window_params = [{transform_indices = @transform_0, window_bounds = array<i64: 8, 256>}, {pipeline_mode = #tpu.pipeline_mode<synchronous>, transform_indices = @transform_1, window_bounds = array<i64: 1, 256>}, {pipeline_mode = #tpu.pipeline_mode<synchronous>, transform_indices = @transform_2, window_bounds = array<i64: 1, 256>}, {transform_indices = @transform_3, window_bounds = array<i64: 1, 128>}]} {
    %c0 = arith.constant 0 : index
    %c0_0 = arith.constant 0 : index
    %0 = vector.load %arg1[%c0, %c0_0] : memref<8x256xf32, #tpu.memory_space<vmem>>, vector<8x256xf32>
    %c16_i32 = arith.constant 16 : i32
    %1 = tpu.dynamic_rotate %0 by %c16_i32 dim 1 : vector<8x256xf32>, i32 -> vector<8x256xf32>
    %2 = arith.subf %0, %1 : vector<8x256xf32>
    %3 = math.absf %2 : vector<8x256xf32>
    %c1_i32 = arith.constant 1 : i32
    %4 = tpu.dynamic_rotate %0 by %c1_i32 dim 1 : vector<8x256xf32>, i32 -> vector<8x256xf32>
    %5 = arith.subf %0, %4 : vector<8x256xf32>
    %6 = math.absf %5 : vector<8x256xf32>
    %c0_1 = arith.constant 0 : index
    %c0_2 = arith.constant 0 : index
    %7 = vector.load %arg2[%c0_1, %c0_2] : memref<1x256xf32, #tpu.memory_space<vmem>>, vector<1x256xf32>
    %8 = vector.broadcast %7 : vector<1x256xf32> to vector<8x256xf32>
    %9 = arith.mulf %3, %8 : vector<8x256xf32>
    %c0_3 = arith.constant 0 : index
    %c0_4 = arith.constant 0 : index
    %10 = vector.load %arg3[%c0_3, %c0_4] : memref<1x256xf32, #tpu.memory_space<vmem>>, vector<1x256xf32>
    %11 = vector.broadcast %10 : vector<1x256xf32> to vector<8x256xf32>
    %12 = arith.mulf %6, %11 : vector<8x256xf32>
    %13 = arith.addf %9, %12 : vector<8x256xf32>
    %14 = vector.shape_cast %13 : vector<8x256xf32> to vector<1x8x256xf32>
    %cst = arith.constant dense<0.000000e+00> : vector<1xf32>
    %15 = vector.multi_reduction <add>, %14, %cst [1, 2] : vector<1x8x256xf32> to vector<1xf32>
    %16 = vector.shape_cast %15 : vector<1xf32> to vector<1x1x1xf32>
    %17 = vector.extract %16[0, 0, 0] : f32 from vector<1x1x1xf32>
    %18 = vector.broadcast %17 : f32 to vector<1x1xf32>
    %19 = vector.shape_cast %18 : vector<1x1xf32> to vector<1x1xf32>
    %20 = vector.broadcast %19 : vector<1x1xf32> to vector<1x128xf32>
    %c0_5 = arith.constant 0 : index
    %c0_6 = arith.constant 0 : index
    %21 = vector.load %arg4[%c0_5, %c0_6] : memref<1x128xf32, #tpu.memory_space<vmem>>, vector<1x128xf32>
    tpu.vector_store %arg4[%c0_5, %c0_6], %20 {strides = array<i32>} : memref<1x128xf32, #tpu.memory_space<vmem>>, vector<1x128xf32>,
    return
  }
  func.func @transform_0(%arg0: i32) -> (i32, i32) {
    %c0_i32 = arith.constant 0 : i32
    %c0_i32_0 = arith.constant 0 : i32
    return %arg0, %c0_i32 : i32, i32
  }
  func.func @transform_1(%arg0: i32) -> (i32, i32) {
    %c0_i32 = arith.constant 0 : i32
    %c0_i32_0 = arith.constant 0 : i32
    %c0_i32_1 = arith.constant 0 : i32
    return %c0_i32, %c0_i32_0 : i32, i32
  }
  func.func @transform_2(%arg0: i32) -> (i32, i32) {
    %c0_i32 = arith.constant 0 : i32
    %c0_i32_0 = arith.constant 0 : i32
    %c0_i32_1 = arith.constant 0 : i32
    return %c0_i32, %c0_i32_0 : i32, i32
  }
  func.func @transform_3(%arg0: i32) -> (i32, i32) {
    %c0_i32 = arith.constant 0 : i32
    %c0_i32_0 = arith.constant 0 : i32
    return %arg0, %c0_i32 : i32, i32
  }
}

</mosaic_0001>

<bundles_post_ra>
// kernel: tpu_custom_call.1
= control target key start
LH: loop header
LB: loop body
LE: loop exit
PB: predicated region body
PF: predicated region fallthrough
CT: control target
= control target key end

     0   :  { %8 = vsyncpa [#allocation3], 0  ;;  %s278_s0 = inlined_call_operand.hbm [shape: f32[8,256], index: 0, kind: input, shape index: {}]   ;;  %s279_s1 = inlined_call_operand.hbm [shape: f32[1,256], index: 1, kind: input, shape index: {}]   ;;  %s280_s2 = inlined_call_operand.hbm [shape: f32[1,256], index: 2, kind: input, shape index: {}]   ;;  %s281_s3 = inlined_call_operand.hbm [shape: f32[1,128], index: 3, kind: output, shape index: {}]  }
   0x1   :  { %9 = vsyncpa [#allocation6], 0  ;;  %s27_s14 = sshll.u32 %s279_s1, 4  ;;  %s28_s14 = int_to_ptr.hbm [resolvable:$true] %s27_s14 }
   0x2   :  { %10 = vsyncpa [#allocation4], 0  ;;  %s240_s15 = smov [#allocation5]   ;;  %s16_s19 = sshll.u32 %s278_s0, 4  ;;  %s17_s19 = int_to_ptr.hbm [resolvable:$true] %s16_s19 }
   0x3   :  { %s29_s16 = sshll.u32 %s240_s15, 4  ;;  %s241_s20 = smov [#allocation2]   ;;  %s30_s16 = int_to_ptr.vmem [resolvable:$true] %s29_s16 }
   0x4   :  { %32 = dma.hbm_to_vmem [thread:$0]  %s28_s14, 32, %s30_s16, [#allocation6]  }
   0x5   :  { %s18_s21 = sshll.u32 %s241_s20, 4  ;;  %s38_s24 = sshll.u32 %s280_s2, 4  ;;  %s19_s21 = int_to_ptr.vmem [resolvable:$true] %s18_s21  ;;  %s39_s24 = int_to_ptr.hbm [resolvable:$true] %s38_s24 }
   0x6   :  { %21 = dma.hbm_to_vmem [thread:$0]  %s17_s19, 256, %s19_s21, [#allocation3]  }
   0x7   :  { %s242_s1 = smov [#allocation7]  }
   0x8   :  { %s40_s25 = sshll.u32 %s242_s1, 4  ;;  %s41_s25 = int_to_ptr.vmem [resolvable:$true] %s40_s25 }
   0x9   :  { %43 = dma.hbm_to_vmem [thread:$0]  %s39_s24, 32, %s41_s25, [#allocation6]  }
   0xa   :  { %234 = dma.done.wait [#allocation3], 256  }
   0xb   :  { %235 = vsyncadd [#allocation3], 4294967040 }
   0xc   :  { %236 = dma.done.wait [#allocation6], 64  }
   0xd   :  { %237 = vsyncadd [#allocation6], 4294967232  ;;  %v56_v0 = vld [vmem:[#allocation2] sm:$0xff]  ;;  %s243_s0 = smov 1   ;;  %s244_s26 = smov 16   ;;  %v57_v1 = vld [vmem:[#allocation2 + $0x8] sm:$0xff]  ;;  %v62_v2 = vlaneseq }
   0xe   :  { %71 = vrot.lane.b32.xlu1 %v56_v0, %s243_s0  ;;  %58 = vrot.lane.b32.xlu0 %v56_v0, %s244_s26  ;;  %v82_v6 = vld [vmem:[#allocation5] sm:$0x3]  ;;  %v90_v7 = vld [vmem:[#allocation7] sm:$0x3]  ;;  %s245_s2 = smov [#allocation8]   ;;  %s119_s30 = sshll.u32 %s281_s3, 4  ;;  %s120_s30 = int_to_ptr.hbm [resolvable:$true] %s119_s30 }
   0xf   :  { %v63_v5 = vand.u32 127, %v62_v2  ;;  %v84_v10 = vperm.slane %v82_v6, 0  ;;  %v92_v11 = vperm.slane %v90_v7, 0  ;;  %v93_v12 = vperm.slane %v90_v7, 1  ;;  %s117_s27 = sshll.u32 %s245_s2, 4  ;;  %s118_s27 = int_to_ptr.vmem [resolvable:$true] %s117_s27 }
  0x10   :  { %v85_v21 = vperm.slane %v82_v6, 1 }
  0x11   :  { %vm75_vm0 = vcmp.lt.s32.totalorder %v63_v5, 1  ;;  %vm64_vm1 = vcmp.lt.s32.totalorder %v63_v5, 16 }
  0x16   :  { %73 = vrot.lane.b32.xlu1 %v57_v1, %s243_s0  ;;  %60 = vrot.lane.b32.xlu0 %v57_v1, %s244_s26 }
  0x80   :  { %v72_v3 = vpop.permute.xlu1 %71  ;;  %v59_v4 = vpop.permute.xlu0 %58 }
  0x88   :  { %v74_v8 = vpop.permute.xlu1 %73  ;;  %v61_v9 = vpop.permute.xlu0 %60 }
  0x89   :  { %v76_v13 = vsel %vm75_vm0, %v72_v3, %v74_v8  ;;  %v77_v14 = vsel %vm75_vm0, %v74_v8, %v72_v3  ;;  %v65_v15 = vsel %vm64_vm1, %v59_v4, %v61_v9  ;;  %v66_v16 = vsel %vm64_vm1, %v61_v9, %v59_v4 }
  0x8a   :  { %v78_v17 = vsub.f32 %v56_v0, %v77_v14  ;;  %v79_v18 = vsub.f32 %v57_v1, %v76_v13  ;;  %v67_v19 = vsub.f32 %v56_v0, %v66_v16  ;;  %v68_v20 = vsub.f32 %v57_v1, %v65_v15 }
  0x8c   :  { %v80_v22 = vand.u32 2147483647, %v78_v17  ;;  %v81_v23 = vand.u32 2147483647, %v79_v18  ;;  %v69_v24 = vand.u32 2147483647, %v67_v19 }
  0x8d   :  { %v70_v25 = vand.u32 2147483647, %v68_v20 }
  0x8e   :  { %v88_v26 = vmul.f32 %v84_v10, %v69_v24  ;;  %v96_v27 = vmul.f32 %v92_v11, %v80_v22  ;;  %v97_v28 = vmul.f32 %v93_v12, %v81_v23 }
  0x8f   :  { %v89_v29 = vmul.f32 %v85_v21, %v70_v25 }
  0x90   :  { %v98_v30 = vadd.f32 %v96_v27, %v88_v26 }
  0x91   :  { %v99_v31 = vadd.f32 %v97_v28, %v89_v29 }
  0x93   :  { %v100_v32 = vadd.f32 %v99_v31, %v98_v30 }
  0x95   :  { %101 = vadd.xlane.f32.xlu2 %v100_v32 }
 0x108   :  { %v102_v33 = vpop.xlane.xlu2 %101 }
 0x109   :  { %v103_v34 = vrot.slane %v102_v33, 4 }
 0x10b   :  { %v104_v35 = vadd.f32 %v103_v34, %v102_v33 }
 0x10d   :  { %v105_v36 = vrot.slane %v104_v35, 2 }
 0x10f   :  { %v106_v37 = vadd.f32 %v105_v36, %v104_v35 }
 0x111   :  { %v107_v38 = vrot.slane %v106_v37, 1 }
 0x113   :  { %v108_v39 = vadd.f32 %v107_v38, %v106_v37 }
 0x115   :  { %130 = vpush %v108_v39 }
 0x146   :  { %s131_s4 = spop %130 }
 0x147   :  { %v110_v40 = vstv %s131_s4 }
 0x148   :  { %111 = vst [vmem:[#allocation8] sm:$0x1] %v110_v40 }
 0x149   :  { %122 = dma.vmem_to_hbm [thread:$0]  %s118_s27, 16, %s120_s30, [#allocation4]  }
 0x14a   :  { %238 = dma.done.wait [#allocation4], 16  }
 0x14b   :  { %239 = vsyncadd [#allocation4], 4294967280 }
 0x14c   :  { %127 = vsyncpa [#allocation3], 1 }
 0x14d   :  { %128 = vsyncpa [#allocation6], 1 }
 0x14e   :  { %129 = vsyncpa [#allocation4], 1 }

</bundles_post_ra>
